<compile_context>
chip_gen: v7x
topology: tpu7x:2x2x1
jax: 0.10.0
libtpu: 0.0.40
codegen_flags: <defaults>
</compile_context>

<pallas_src>
import jax
import jax.numpy as jnp
from jax.experimental import pallas as pl
from jax.experimental.pallas import tpu as pltpu

D_IN = 8 * 8 * 12  # 768


def blend_linear_kernel(x_ref, w_ref, b_ref, t_ref, o_ref):
    # x_ref: (TB, D) f32  -- streamed batch tile
    # w_ref: (2, D)  f32  -- row 0 = early weights, row 1 = late weights (VMEM-resident)
    # b_ref: (1, 2)  f32  -- [b_early, b_late] (VMEM-resident)
    # t_ref: (1, TB) f32  -- lane-dense blend factors for this tile
    # o_ref: (1, TB) f32  -- lane-dense output row for this tile
    x = x_ref[...]
    we = w_ref[0:1, :]                    # (1, D)
    wl = w_ref[1:2, :]                    # (1, D)
    tb = x.shape[0]

    # Two 768-long dot products per row on VPU (mul) + XLU (cross-lane reduce).
    # Deliberately avoids the MXU: an f32 matmul with N=2 is emulated multi-pass
    # with ~2/256 useful output columns and would become the binding unit.
    early = jnp.sum(x * we, axis=1).reshape(1, tb)   # (1, TB) lane-dense
    late = jnp.sum(x * wl, axis=1).reshape(1, tb)    # (1, TB) lane-dense

    t = t_ref[...]                        # (1, TB)
    be = b_ref[0:1, 0:1]                  # (1, 1)
    bl = b_ref[0:1, 1:2]                  # (1, 1)

    # early*(1-t) + late*t == early + t*(late-early); fuse the bias the same way.
    blend = early + t * (late - early)
    bias = be + t * (bl - be)
    o_ref[...] = blend + bias


def model_forward(x, t, w_early, b_early, w_late, b_late, *, tb=2048):
    """x: (B, 768) f32, t: (B,) f32 -> (B,) f32."""
    B, D = x.shape
    assert D == D_IN

    x = x.astype(jnp.float32)
    t = jnp.asarray(t, jnp.float32).reshape(B)

    # Fuse both Linear(768, 1) layers into one resident (2, D) weight block + (1, 2) bias.
    w = jnp.stack(
        [jnp.asarray(w_early, jnp.float32).reshape(D),
         jnp.asarray(w_late, jnp.float32).reshape(D)], axis=0)          # (2, D)
    b = jnp.stack(
        [jnp.asarray(b_early, jnp.float32).reshape(()),
         jnp.asarray(b_late, jnp.float32).reshape(())]).reshape(1, 2)   # (1, 2)

    # Batch tile: multiple of 8 (sublane constraint on the x block), <= tb, and
    # <= B whenever B >= 8 so x never needs a wrapper-side pad for real batches.
    tb8 = max(8, (int(tb) // 8) * 8)
    TB = max(8, min(tb8, (B // 8) * 8))
    B_rows = B
    if B < TB:                      # only tiny inputs (B < 8): pad x up to one tile
        x = jnp.pad(x, ((0, TB - B), (0, 0)))
        B_rows = TB
    NT = pl.cdiv(B_rows, TB)        # partial tail x block is masked by Pallas

    # Lane-dense t / out: (NT, 1, TB) so each block's last two dims equal the full
    # array dims.  Only t (4*B bytes) gets the cheap pad, never x.
    t_pad = jnp.pad(t, (0, NT * TB - B)).reshape(NT, 1, TB)

    out = pl.pallas_call(
        blend_linear_kernel,
        out_shape=jax.ShapeDtypeStruct((NT, 1, TB), jnp.float32),
        grid=(NT,),
        in_specs=[
            pl.BlockSpec((TB, D), lambda i: (i, 0)),            # x streams per tile
            pl.BlockSpec((2, D), lambda i: (0, 0)),             # weights resident
            pl.BlockSpec((1, 2), lambda i: (0, 0)),             # bias resident
            pl.BlockSpec((None, 1, TB), lambda i: (i, 0, 0)),   # t, lane-dense
        ],
        out_specs=pl.BlockSpec((None, 1, TB), lambda i: (i, 0, 0)),
        compiler_params=pltpu.CompilerParams(
            dimension_semantics=("parallel",),
            # x double-buffer + generous headroom for the small resident/lane-dense
            # blocks; stays under v7x's 64 MiB physical VMEM.
            vmem_limit_bytes=int(min(2 * TB * D * 4 + (16 << 20), 60 << 20)),
        ),
        cost_estimate=pl.CostEstimate(
            flops=B_rows * (4 * D + 8),
            bytes_accessed=B_rows * D * 4 + NT * TB * 8 + 2 * D * 4 + 8,
            transcendentals=0,
        ),
    )(x, w, b, t_pad)

    # PyTorch: .squeeze() on (B, 1) -> (B,); drop padded rows.
    return out.reshape(NT * TB)[:B]


if __name__ == "__main__":
    key = jax.random.PRNGKey(0)
    k_x, k_t, k_we, k_be, k_wl, k_bl = jax.random.split(key, 6)

    # Deterministic params (shapes match nn.Linear(768, 1): weight (768,) per head, bias scalar)
    bound = 1.0 / jnp.sqrt(D_IN)
    w_early = jax.random.uniform(k_we, (D_IN,), minval=-bound, maxval=bound, dtype=jnp.float32)
    b_early = jax.random.uniform(k_be, (1,), minval=-bound, maxval=bound, dtype=jnp.float32)[0]
    w_late = jax.random.uniform(k_wl, (D_IN,), minval=-bound, maxval=bound, dtype=jnp.float32)
    b_late = jax.random.uniform(k_bl, (1,), minval=-bound, maxval=bound, dtype=jnp.float32)[0]

    def ref_fn(x, t):
        ref_early = x @ w_early + b_early
        ref_late = x @ w_late + b_late
        return ref_early * (1.0 - t) + ref_late * t

    # Small-shape check consistent with the module (B=2).
    B = 2
    x = jax.random.normal(k_x, (B, D_IN), dtype=jnp.float32)
    t = jax.random.uniform(k_t, (B,), dtype=jnp.float32)
    out = jax.block_until_ready(model_forward(x, t, w_early, b_early, w_late, b_late))
    assert out.shape == (B,)
    assert jnp.allclose(out, ref_fn(x, t), atol=1e-5, rtol=1e-5)

    # Uneven grid / partial tail block path (B % TB != 0, no wrapper-side pad of x).
    B2 = 300
    k_x2, k_t2 = jax.random.split(k_x)
    x2 = jax.random.normal(k_x2, (B2, D_IN), dtype=jnp.float32)
    t2 = jax.random.uniform(k_t2, (B2,), dtype=jnp.float32)
    out2 = jax.block_until_ready(
        model_forward(x2, t2, w_early, b_early, w_late, b_late, tb=128)
    )
    assert out2.shape == (B2,)
    assert jnp.allclose(out2, ref_fn(x2, t2), atol=1e-4, rtol=1e-4)

    print("KERNEL_OK")
</pallas_src>

<mosaic_0001>
module attributes {stable_mosaic.version = 11 : i64} {
  func.func @blend_linear_kernel(%arg0: i32, %arg1: memref<8x768xf32, #tpu.memory_space<vmem>>, %arg2: memref<2x768xf32, #tpu.memory_space<vmem>>, %arg3: memref<1x2xf32, #tpu.memory_space<vmem>>, %arg4: memref<1x1x8xf32, #tpu.memory_space<vmem>>, %arg5: memref<1x1x8xf32, #tpu.memory_space<vmem>>) attributes {dimension_semantics = [#tpu.dimension_semantics<parallel>], iteration_bounds = array<i64: 1>, scalar_prefetch = 0 : i64, scratch_operands = 0 : i64, tpu.core_type = #tpu.core_type<tc>, window_params = [{transform_indices = @transform_0, window_bounds = array<i64: 8, 768>}, {pipeline_mode = #tpu.pipeline_mode<synchronous>, transform_indices = @transform_1, window_bounds = array<i64: 2, 768>}, {pipeline_mode = #tpu.pipeline_mode<synchronous>, transform_indices = @transform_2, window_bounds = array<i64: 1, 2>}, {transform_indices = @transform_3, window_bounds = array<i64: 1, 1, 8>}, {transform_indices = @transform_4, window_bounds = array<i64: 1, 1, 8>}]} {
    %c0 = arith.constant 0 : index
    %c0_0 = arith.constant 0 : index
    %0 = vector.load %arg1[%c0, %c0_0] : memref<8x768xf32, #tpu.memory_space<vmem>>, vector<8x768xf32>
    %c0_1 = arith.constant 0 : index
    %c0_2 = arith.constant 0 : index
    %1 = vector.load %arg2[%c0_1, %c0_2] : memref<2x768xf32, #tpu.memory_space<vmem>>, vector<1x768xf32>
    %c1 = arith.constant 1 : index
    %c0_3 = arith.constant 0 : index
    %2 = vector.load %arg2[%c1, %c0_3] : memref<2x768xf32, #tpu.memory_space<vmem>>, vector<1x768xf32>
    %3 = vector.broadcast %1 : vector<1x768xf32> to vector<8x768xf32>
    %4 = arith.mulf %0, %3 : vector<8x768xf32>
    %cst = arith.constant dense<0.000000e+00> : vector<8xf32>
    %5 = vector.multi_reduction <add>, %4, %cst [1] : vector<8x768xf32> to vector<8xf32>
    %6 = vector.shape_cast %5 : vector<8xf32> to vector<1x8xf32>
    %7 = vector.broadcast %2 : vector<1x768xf32> to vector<8x768xf32>
    %8 = arith.mulf %0, %7 : vector<8x768xf32>
    %cst_4 = arith.constant dense<0.000000e+00> : vector<8xf32>
    %9 = vector.multi_reduction <add>, %8, %cst_4 [1] : vector<8x768xf32> to vector<8xf32>
    %10 = vector.shape_cast %9 : vector<8xf32> to vector<1x8xf32>
    %c0_5 = arith.constant 0 : index
    %c0_6 = arith.constant 0 : index
    %c0_7 = arith.constant 0 : index
    %11 = vector.load %arg4[%c0_5, %c0_6, %c0_7] : memref<1x1x8xf32, #tpu.memory_space<vmem>>, vector<1x1x8xf32>
    %12 = vector.shape_cast %11 : vector<1x1x8xf32> to vector<1x8xf32>
    %c0_8 = arith.constant 0 : index
    %c0_9 = arith.constant 0 : index
    %13 = vector.load %arg3[%c0_8, %c0_9] : memref<1x2xf32, #tpu.memory_space<vmem>>, vector<1x1xf32>
    %c0_10 = arith.constant 0 : index
    %c1_11 = arith.constant 1 : index
    %14 = vector.load %arg3[%c0_10, %c1_11] : memref<1x2xf32, #tpu.memory_space<vmem>>, vector<1x1xf32>
    %15 = arith.subf %10, %6 : vector<1x8xf32>
    %16 = arith.mulf %12, %15 : vector<1x8xf32>
    %17 = arith.addf %6, %16 : vector<1x8xf32>
    %18 = arith.subf %14, %13 : vector<1x1xf32>
    %19 = vector.broadcast %18 : vector<1x1xf32> to vector<1x8xf32>
    %20 = arith.mulf %12, %19 : vector<1x8xf32>
    %21 = vector.broadcast %13 : vector<1x1xf32> to vector<1x8xf32>
    %22 = arith.addf %21, %20 : vector<1x8xf32>
    %23 = arith.addf %17, %22 : vector<1x8xf32>
    %c0_12 = arith.constant 0 : index
    %c0_13 = arith.constant 0 : index
    %c0_14 = arith.constant 0 : index
    %24 = vector.load %arg5[%c0_12, %c0_13, %c0_14] : memref<1x1x8xf32, #tpu.memory_space<vmem>>, vector<1x1x8xf32>
    %25 = vector.shape_cast %24 : vector<1x1x8xf32> to vector<1x8xf32>
    %26 = vector.shape_cast %23 : vector<1x8xf32> to vector<1x1x8xf32>
    tpu.vector_store %arg5[%c0_12, %c0_13, %c0_14], %26 {strides = array<i32>} : memref<1x1x8xf32, #tpu.memory_space<vmem>>, vector<1x1x8xf32>,
    return
  }
  func.func @transform_0(%arg0: i32) -> (i32, i32) {
    %c0_i32 = arith.constant 0 : i32
    %c0_i32_0 = arith.constant 0 : i32
    return %arg0, %c0_i32 : i32, i32
  }
  func.func @transform_1(%arg0: i32) -> (i32, i32) {
    %c0_i32 = arith.constant 0 : i32
    %c0_i32_0 = arith.constant 0 : i32
    %c0_i32_1 = arith.constant 0 : i32
    return %c0_i32, %c0_i32_0 : i32, i32
  }
  func.func @transform_2(%arg0: i32) -> (i32, i32) {
    %c0_i32 = arith.constant 0 : i32
    %c0_i32_0 = arith.constant 0 : i32
    %c0_i32_1 = arith.constant 0 : i32
    return %c0_i32, %c0_i32_0 : i32, i32
  }
  func.func @transform_3(%arg0: i32) -> (i32, i32, i32) {
    %c0_i32 = arith.constant 0 : i32
    %c0_i32_0 = arith.constant 0 : i32
    %c0_i32_1 = arith.constant 0 : i32
    return %arg0, %c0_i32, %c0_i32_0 : i32, i32, i32
  }
  func.func @transform_4(%arg0: i32) -> (i32, i32, i32) {
    %c0_i32 = arith.constant 0 : i32
    %c0_i32_0 = arith.constant 0 : i32
    %c0_i32_1 = arith.constant 0 : i32
    return %arg0, %c0_i32, %c0_i32_0 : i32, i32, i32
  }
}

</mosaic_0001>

<bundles_post_ra>
// kernel: tpu_custom_call.1
= control target key start
LH: loop header
LB: loop body
LE: loop exit
PB: predicated region body
PF: predicated region fallthrough
CT: control target
= control target key end

     0   :  { %9 = vsyncpa [#allocation3], 0  ;;  %s531_s0 = inlined_call_operand.hbm [shape: f32[8,768], index: 0, kind: input, shape index: {}]   ;;  %s532_s1 = inlined_call_operand.hbm [shape: f32[2,768], index: 1, kind: input, shape index: {}]   ;;  %s533_s2 = inlined_call_operand.vmem [shape: f32[1,2], index: 2, kind: input, shape index: {}]   ;;  %s534_s3 = inlined_call_operand.vmem [shape: f32[1,1,8], index: 3, kind: input, shape index: {}]   ;;  %s535_s4 = inlined_call_operand.hbm [shape: f32[1,1,8], index: 4, kind: output, shape index: {}]  }
   0x1   :  { %10 = vsyncpa [#allocation6], 0 }
   0x2   :  { %11 = vsyncpa [#allocation4], 0  ;;  %s402_s15 = smov [#allocation2]   ;;  %s403_s17 = smov [#allocation5]  }
   0x3   :  { %s18_s16 = sshll.u32 %s402_s15, 4  ;;  %s28_s18 = sshll.u32 %s403_s17, 4  ;;  %s19_s16 = int_to_ptr.vmem [resolvable:$true] %s18_s16  ;;  %s29_s18 = int_to_ptr.vmem [resolvable:$true] %s28_s18 }
   0x4   :  { %s330_s21 = scalar_lea.hbm %s531_s0, 768 }
   0x5   :  { %p331_p0 = scmp.ne.s32.totalorder %s531_s0, %s330_s21  ;;  %p334_p1 = scmp.lt.u32.totalorder %s330_s21, %s531_s0 }
   0x7   :  { %p336_p2 = pnand %p334_p1, %p331_p0 }
   0x9   :  { %339 = shalt.err (!%p336_p2)
}
   0xa   :  { %s340_s26 = scalar_lea.vmem %s19_s16, 768  ;;  %p345_p4 = scmp.lt.s32.totalorder %s19_s16, %s19_s16 }
   0xb   :  { %p341_p3 = scmp.ne.s32.totalorder %s19_s16, %s340_s26  ;;  %p346_p5 = scmp.lt.s32.totalorder %s340_s26, %s340_s26 }
   0xd   :  { %p347_p6 = por %p346_p5, %p345_p4 }
   0xf   :  { %p348_p7 = pnand %p347_p6, %p341_p3 }
  0x11   :  { %351 = shalt.err (!%p348_p7)
}
  0x12   :  { %21 = dma.hbm_to_vmem [thread:$0]  %s531_s0, 768, %s19_s16, [#allocation3]  }
  0x13   :  { %s352_s5 = scalar_lea.hbm %s532_s1, 192 }
  0x14   :  { %p353_p8 = scmp.ne.s32.totalorder %s532_s1, %s352_s5  ;;  %p356_p9 = scmp.lt.u32.totalorder %s352_s5, %s532_s1 }
  0x16   :  { %p358_p10 = pnand %p356_p9, %p353_p8 }
  0x18   :  { %361 = shalt.err (!%p358_p10)
}
  0x19   :  { %s362_s10 = scalar_lea.vmem %s29_s18, 192  ;;  %p367_p12 = scmp.lt.s32.totalorder %s29_s18, %s29_s18 }
  0x1a   :  { %p363_p11 = scmp.ne.s32.totalorder %s29_s18, %s362_s10  ;;  %p368_p13 = scmp.lt.s32.totalorder %s362_s10, %s362_s10 }
  0x1c   :  { %p369_p0 = por %p368_p13, %p367_p12 }
  0x1e   :  { %p370_p1 = pnand %p369_p0, %p363_p11 }
  0x20   :  { %373 = shalt.err (!%p370_p1)
}
  0x21   :  { %31 = dma.hbm_to_vmem [thread:$0]  %s532_s1, 192, %s29_s18, [#allocation6]  }
  0x22   :  { %396 = dma.done.wait [#allocation3], 768  }
  0x23   :  { %397 = vsyncadd [#allocation3], 4294966528 }
  0x24   :  { %398 = dma.done.wait [#allocation6], 192  }
  0x25   :  { %399 = vsyncadd [#allocation6], 4294967104  ;;  %v52_v0 = vlaneseq  ;;  %v42_v6 = vld [vmem:[#allocation2] sm:$0xff]  ;;  %v43_v7 = vld [vmem:[#allocation2 + $0x8] sm:$0xff]  ;;  %s404_s13 = smov 1   ;;  %v405_v51 = vmov 0  }
  0x26   :  { %v44_v8 = vld [vmem:[#allocation2 + $0x10] sm:$0xff]  ;;  %v485_v17 = vld [vmem:[%s533_s2] sm:$0x1]  ;;  %v45_v18 = vld [vmem:[#allocation2 + $0x18] sm:$0xff]  ;;  %327 = vset.pattern.permute.xlu1 %v405_v51  ;;  %v406_v52 = vmov 1   ;;  %vm302_vm0 = vcmask 57344  }
  0x27   :  { %v458_v1 = vshrl.u32 %v52_v0, 7  ;;  %v48_v11 = vld [vmem:[#allocation5] ss:$2 sm:$0x3f]  ;;  %260 = vrot.lane.b32.xlu1 %v485_v17, %s404_s13  ;;  %v46_v25 = vld [vmem:[#allocation2 + $0x20] sm:$0xff]  ;;  %v47_v32 = vld [vmem:[#allocation2 + $0x28] sm:$0xff]  ;;  %328 = vset.pattern.permute.xlu0 %v406_v52 }
  0x28   :  { %v50_v12 = vld [vmem:[#allocation5 + $0x1] ss:$2 sm:$0x3f]  ;;  %v228_v53 = vand.u32 127, %v52_v0  ;;  %v407_v57 = vmov 1966171168  }
  0x29   :  { %v461_v2 = vsub.s32 0, %v458_v1  ;;  %v464_v3 = vsub.s32 1, %v458_v1  ;;  %v467_v4 = vsub.s32 2, %v458_v1  ;;  %v470_v5 = vsub.s32 3, %v458_v1 }
  0x2a   :  { %v473_v9 = vsub.s32 4, %v458_v1  ;;  %v476_v10 = vsub.s32 5, %v458_v1  ;;  %v497_v54 = vsub.s32 %v228_v53, %v458_v1  ;;  %v180_v58 = vunpack.c.l.s4 %v407_v57 }
  0x2b   :  { %v55_v13 = vrot.slane %v48_v11, %v461_v2  ;;  %v59_v14 = vrot.slane %v48_v11, %v464_v3  ;;  %v63_v15 = vrot.slane %v48_v11, %v467_v4  ;;  %v67_v16 = vrot.slane %v48_v11, %v470_v5 }
  0x2c   :  { %v99_v19 = vrot.slane %v50_v12, %v461_v2  ;;  %v103_v20 = vrot.slane %v50_v12, %v464_v3  ;;  %v71_v21 = vrot.slane %v48_v11, %v473_v9  ;;  %v107_v26 = vrot.slane %v50_v12, %v467_v4 }
  0x2d   :  { %v82_v22 = vmul.f32 %v55_v13, %v42_v6  ;;  %v83_v23 = vmul.f32 %v59_v14, %v43_v7  ;;  %v84_v24 = vmul.f32 %v63_v15, %v44_v8  ;;  %v111_v27 = vrot.slane %v50_v12, %v470_v5 }
  0x2e   :  { %v75_v28 = vrot.slane %v48_v11, %v476_v10  ;;  %v85_v29 = vmul.f32 %v67_v16, %v45_v18  ;;  %v126_v31 = vmul.f32 %v99_v19, %v42_v6  ;;  %v115_v33 = vrot.slane %v50_v12, %v473_v9 }
  0x2f   :  { %v88_v30 = vadd.f32 %v83_v23, %v82_v22  ;;  %v127_v34 = vmul.f32 %v103_v20, %v43_v7  ;;  %v128_v35 = vmul.f32 %v107_v26, %v44_v8  ;;  %v86_v36 = vmul.f32 %v71_v21, %v46_v25 }
  0x30   :  { %v119_v38 = vrot.slane %v50_v12, %v476_v10  ;;  %v129_v39 = vmul.f32 %v111_v27, %v45_v18  ;;  %v87_v41 = vmul.f32 %v75_v28, %v47_v32  ;;  %v130_v43 = vmul.f32 %v115_v33, %v46_v25 }
  0x31   :  { %v89_v37 = vadd.f32 %v88_v30, %v84_v24  ;;  %v132_v40 = vadd.f32 %v127_v34, %v126_v31  ;;  %v181_v60 = vunpack.c.0.s8 %v180_v58  ;;  %v169_v62 = vsub.s32 6, %v458_v1 }
  0x32   :  { %v131_v46 = vmul.f32 %v119_v38, %v47_v32  ;;  %v173_v63 = vsub.s32 7, %v458_v1 }
  0x33   :  { %v90_v42 = vadd.f32 %v89_v37, %v85_v29  ;;  %v133_v44 = vadd.f32 %v132_v40, %v128_v35  ;;  %v184_v0 = vsub.s32 %v181_v60, %v458_v1  ;;  %v139_v29 = vld [vmem:[%s534_s3] sm:$0x1]  ;;  %s408_s3 = smov [#allocation7]  }
  0x34   :  { %s310_s15 = sshll.u32 %s408_s3, 4  ;;  %s311_s15 = int_to_ptr.vmem [resolvable:$true] %s310_s15 }
  0x35   :  { %v91_v45 = vadd.f32 %v90_v42, %v86_v36  ;;  %v134_v47 = vadd.f32 %v133_v44, %v129_v39  ;;  %s374_s16 = scalar_lea.vmem %s311_s15, 16  ;;  %s378_s17 = scalar_lea.vmem %s311_s15, 32 }
  0x36   :  { %p375_p2 = scmp.ne.s32.totalorder %s311_s15, %s374_s16  ;;  %p379_p3 = scmp.lt.s32.totalorder %s311_s15, %s311_s15 }
  0x37   :  { %v92_v48 = vadd.f32 %v91_v45, %v87_v41  ;;  %v135_v49 = vadd.f32 %v134_v47, %v130_v43  ;;  %p380_p4 = scmp.lt.s32.totalorder %s378_s17, %s374_s16 }
  0x39   :  { %93 = vadd.xlane.f32.xlu0 %v92_v48  ;;  %v136_v50 = vadd.f32 %v135_v49, %v131_v46  ;;  %p381_p5 = por %p380_p4, %p379_p3 }
  0x3b   :  { %p382_p6 = pnand %p381_p5, %p375_p2 }
  0x3d   :  { %137 = vadd.xlane.f32.xlu0 %v136_v50 }
  0x99   :  { %v261_v55 = vpop.permute.xlu1 %260 }
  0x9a   :  { %v263_v56 = vsub.f32 %v485_v17, %v261_v55 }
  0x9c   :  { %266 = vperm.xlu0 %328, %v263_v56  }
  0xa0   :  { %329 = vset.pattern.permute.xlu0 %v405_v51 }
  0xc6   :  { %v94_v59 = vpop.xlane.xlu0 %93 }
  0xca   :  { %v138_v61 = vpop.xlane.xlu0 %137 }
  0xcb   :  { %v141_v6 = vsub.f32 %v138_v61, %v94_v59 }
  0xcd   :  { %v146_v7 = vrot.slane %v141_v6, %v461_v2  ;;  %v150_v8 = vrot.slane %v141_v6, %v464_v3  ;;  %v154_v11 = vrot.slane %v141_v6, %v467_v4  ;;  %v158_v12 = vrot.slane %v141_v6, %v470_v5 }
  0xce   :  { %v162_v13 = vrot.slane %v141_v6, %v473_v9  ;;  %v166_v14 = vrot.slane %v141_v6, %v476_v10  ;;  %v170_v15 = vrot.slane %v141_v6, %v169_v62  ;;  %v174_v16 = vrot.slane %v141_v6, %v173_v63 }
  0xcf   :  { %v175_v18 = vcombine.low %v146_v7, %v150_v8  ;;  %v176_v19 = vcombine.low %v154_v11, %v158_v12 }
  0xd0   :  { %v177_v20 = vcombine.low %v162_v13, %v166_v14  ;;  %v178_v21 = vcombine.low %v170_v15, %v174_v16 }
  0xd1   :  { %v185_v22 = vrot.slane %v175_v18, %v184_v0  ;;  %v192_v1 = vrot.slane %v176_v19, %v184_v0 }
  0xd2   :  { %v199_v23 = vrot.slane %v177_v20, %v184_v0  ;;  %v206_v24 = vrot.slane %v178_v21, %v184_v0 }
  0xd3   :  { %v207_v25 = vcombine.low %v185_v22, %v192_v1 }
  0xd4   :  { %v208_v3 = vcombine.low %v199_v23, %v206_v24 }
  0xd5   :  { %v215_v26 = vrot.slane %v207_v25, %v184_v0 }
  0xd6   :  { %v222_v4 = vrot.slane %v208_v3, %v184_v0 }
  0xd8   :  { %v223_v27 = vcombine.low %v215_v26, %v222_v4 }
  0xda   :  { %225 = vperm.xlu1 %327, %v223_v27  }
  0xde   :  { %275 = vperm.xlu1 %327, %v485_v17  }
 0x11b   :  { %v267_v5 = vpop.permute.xlu0 %266 }
 0x11c   :  { %v272_v28 = vrot.slane %v267_v5, %v461_v2 }
 0x11e   :  { %v273_v33 = vmul.f32 %v272_v28, %v139_v29 }
 0x159   :  { %v226_v9 = vpop.permute.xlu1 %225 }
 0x15a   :  { %v232_v10 = vrot.slane %v226_v9, %v497_v54 }
 0x15c   :  { %v239_v30 = vrot.slane %v232_v10, %v184_v0 }
 0x15d   :  { %v276_v31 = vpop.permute.xlu1 %275 }
 0x15e   :  { %v246_v32 = vrot.slane %v239_v30, %v184_v0  ;;  %v281_v34 = vrot.slane %v276_v31, %v461_v2 }
 0x160   :  { %v248_v35 = vmul.f32 %v246_v32, %v139_v29  ;;  %v282_v36 = vadd.f32 %v281_v34, %v273_v33 }
 0x162   :  { %v253_v17 = vrot.slane %v248_v35, %v461_v2  ;;  %v287_v37 = vrot.slane %v282_v36, %v461_v2 }
 0x164   :  { %255 = vbcast.lane.b32.xlu1 %v253_v17, 256 }
 0x168   :  { %289 = vbcast.lane.b32.xlu1 %v287_v37, 256 }
 0x1d6   :  { %v256_v38 = vpop.permute.xlu1 %255 }
 0x1d7   :  { %v258_v39 = vadd.f32 %v256_v38, %v94_v59 }
 0x1da   :  { %v290_v40 = vpop.permute.xlu1 %289 }
 0x1db   :  { %v292_v41 = vadd.f32 %v290_v40, %v258_v39 }
 0x1dd   :  { %295 = vperm.xlu1 %327, %v292_v41  }
 0x25c   :  { %v296_v42 = vpop.permute.xlu1 %295 }
 0x25d   :  { %v300_v43 = vrot.slane %v296_v42, %v497_v54 }
 0x25f   :  { %303 = vst.msk [vmem:[#allocation7] sm:$0x1] %vm302_vm0, %v300_v43 }
 0x260   :  { %385 = shalt.err (!%p382_p6)
}
 0x261   :  { %s386_s20 = scalar_lea.hbm %s535_s4, 16 }
 0x262   :  { %p387_p7 = scmp.ne.s32.totalorder %s535_s4, %s386_s20  ;;  %p390_p8 = scmp.lt.u32.totalorder %s386_s20, %s535_s4 }
 0x264   :  { %p392_p9 = pnand %p390_p8, %p387_p7 }
 0x266   :  { %395 = shalt.err (!%p392_p9)
}
 0x267   :  { %313 = dma.vmem_to_hbm [thread:$0]  %s311_s15, 16, %s535_s4, [#allocation4]  }
 0x268   :  { %400 = dma.done.wait [#allocation4], 16  }
 0x269   :  { %401 = vsyncadd [#allocation4], 4294967280 }
 0x26a   :  { %317 = vsyncpa [#allocation3], 1 }
 0x26b   :  { %318 = vsyncpa [#allocation6], 1 }
 0x26c   :  { %319 = vsyncpa [#allocation4], 1 }

</bundles_post_ra>
